<compile_context>
chip_gen: v7x
topology: tpu7x:2x2x1
jax: 0.10.0
libtpu: 0.0.40
codegen_flags: <defaults>
</compile_context>

<pallas_src>
import functools

import jax
import jax.numpy as jnp
from jax.experimental import pallas as pl
from jax.experimental.pallas import tpu as pltpu


# ----------------------------------------------------------------------------
# Kernel: one lane-dense column tile of the final Linear per grid step.
# ----------------------------------------------------------------------------
def _decoder_kernel(alpha_ref, *refs, num_hidden):
    # alpha_ref : SMEM (num_hidden,) -- PReLU slopes (scalar prefetch)
    # refs      : x, (w0, b0), ..., (w_{H-1}, b_{H-1}), w_final_tile, b_final_tile, out_tile
    x_ref = refs[0]
    hidden_refs = refs[1:1 + 2 * num_hidden]
    wf_ref = refs[1 + 2 * num_hidden]
    bf_ref = refs[2 + 2 * num_hidden]
    o_ref = refs[3 + 2 * num_hidden]

    # Hidden stack (Linear with BN folded + PReLU).  Recomputed per grid step:
    # cost is negligible vs the final-W tile DMA, and it keeps every grid step
    # independent so the axis can be "parallel" (v7x megacore sharding).
    h = x_ref[...]
    for i in range(num_hidden):
        w = hidden_refs[2 * i][...]
        b = hidden_refs[2 * i + 1][...]
        y = jnp.dot(h, w, preferred_element_type=jnp.float32) + b
        a = alpha_ref[i]                      # scalar from SMEM
        h = jnp.where(y > 0, y, a * y)        # PReLU (single learned slope)

    # Final Linear on this column tile: bf16 weight stream, f32 accumulation.
    wf = wf_ref[...]
    y = jnp.dot(h.astype(wf.dtype), wf, preferred_element_type=jnp.float32)
    o_ref[...] = (y + bf_ref[...]).astype(o_ref.dtype)


# ----------------------------------------------------------------------------
# One-time host-side preparation (call at model-load time, NOT per forward).
# ----------------------------------------------------------------------------
def prepare_decoder_params(hidden_params, final_params, *, eps=1e-5,
                           final_weight_dtype=jnp.bfloat16):
    """Fold BatchNorm (running stats) into the hidden Linear weights, pad the
    final weight/bias to a multiple of 128 columns, and cast the final weight
    to the streaming dtype.  Returns a dict of arrays only (jit-friendly).

    If the underlying PyTorch weights are updated, re-run this function."""
    folded = []
    alphas = []
    for p in hidden_params:
        s = p["gamma"] * jax.lax.rsqrt(p["var"] + eps)
        w_f = (p["w"] * s[None, :]).astype(jnp.float32)
        b_f = ((p["b"] - p["mean"]) * s + p["beta"]).astype(jnp.float32).reshape(1, -1)
        folded.append((w_f, b_f))
        alphas.append(jnp.reshape(p["alpha"], ()))
    alpha_vec = jnp.stack(alphas).astype(jnp.float32)      # (num_hidden,) -> SMEM

    w_out = final_params["w"]
    b_out = final_params["b"]
    n_genes = w_out.shape[1]
    pad_n = pl.cdiv(n_genes, 128) * 128                    # lane-dense, padded ONCE
    if pad_n != n_genes:
        w_out = jnp.pad(w_out, ((0, 0), (0, pad_n - n_genes)))
        b_out = jnp.pad(b_out, (0, pad_n - n_genes))
    w_out = w_out.astype(final_weight_dtype)               # halve streamed HBM bytes
    b_out = b_out.astype(jnp.float32).reshape(1, pad_n)    # tiny; keep f32

    return dict(alpha=alpha_vec, hidden=tuple(folded), w_out=w_out, b_out=b_out)


# ----------------------------------------------------------------------------
# Forward wrapper: single pallas_call (no per-call weight work besides DMA).
# ----------------------------------------------------------------------------
def decoder_forward(x, prepared, *, n_genes, tile_n=4096):
    B, K = x.shape
    hidden = prepared["hidden"]
    num_hidden = len(hidden)
    alpha_vec = prepared["alpha"]
    w_out = prepared["w_out"]          # (H, pad_n), already padded + cast
    b_out = prepared["b_out"]          # (1, pad_n), f32
    H, pad_n = w_out.shape

    # Lane-dense tile; last tile may be partial (masked by Pallas).
    tile_n = max(128, (min(tile_n, pad_n) // 128) * 128)
    grid = (pl.cdiv(pad_n, tile_n),)

    # ---- BlockSpecs (index_maps get the scalar-prefetch ref as trailing arg) ----
    in_specs = [pl.BlockSpec((B, K), lambda j, a: (0, 0))]            # x, resident
    flat_args = [x]
    for w_f, b_f in hidden:
        di, do = w_f.shape
        in_specs.append(pl.BlockSpec((di, do), lambda j, a: (0, 0)))  # resident weight
        in_specs.append(pl.BlockSpec((1, do), lambda j, a: (0, 0)))   # resident bias
        flat_args += [w_f, b_f]
    in_specs.append(pl.BlockSpec((H, tile_n), lambda j, a: (0, j)))   # final W tile
    in_specs.append(pl.BlockSpec((1, tile_n), lambda j, a: (0, j)))   # final b tile
    flat_args += [w_out, b_out]

    # ---- VMEM budget (generation-aware via explicit limit) ----
    w_bytes = jnp.dtype(w_out.dtype).itemsize
    resident_bytes = B * K * 4 + sum(w.size * 4 + b.size * 4 for w, b in hidden)
    streamed_bytes = 2 * (H * tile_n * w_bytes + tile_n * 4 + B * tile_n * 4)  # 2x buffered
    vmem_limit = int(1.4 * (resident_bytes + streamed_bytes)) + (2 << 20)
    vmem_limit = min(max(vmem_limit, 24 << 20), 64 << 20)   # above v5e's 16 MiB default,
                                                            # under v7x's 64 MiB physical

    # ---- advisory cost estimate for XLA's scheduler ----
    hidden_flops = sum(2 * B * w.shape[0] * w.shape[1] for w, _ in hidden)
    cost = pl.CostEstimate(
        flops=int(grid[0] * hidden_flops + 2 * B * H * pad_n),
        transcendentals=0,
        bytes_accessed=int(B * K * 4
                           + sum(w.size * 4 + b.size * 4 for w, b in hidden)
                           + H * pad_n * w_bytes + pad_n * 4 + B * pad_n * 4),
    )

    out = pl.pallas_call(
        functools.partial(_decoder_kernel, num_hidden=num_hidden),
        out_shape=jax.ShapeDtypeStruct((B, pad_n), jnp.float32),
        grid_spec=pltpu.PrefetchScalarGridSpec(
            num_scalar_prefetch=1,             # alpha_vec -> SMEM
            grid=grid,
            in_specs=in_specs,
            out_specs=pl.BlockSpec((B, tile_n), lambda j, a: (0, j)),
        ),
        compiler_params=pltpu.CompilerParams(
            dimension_semantics=("parallel",),  # grid steps independent (megacore OK)
            vmem_limit_bytes=vmem_limit,
        ),
        cost_estimate=cost,
    )(alpha_vec, *flat_args)

    return out[:, :n_genes]


# ----------------------------------------------------------------------------
# References
# ----------------------------------------------------------------------------
def decoder_forward_ref(x, hidden_params, final_params, eps=1e-5):
    """Pure-JAX f32 reference with the original (un-folded) semantics."""
    for p in hidden_params:
        y = x @ p["w"] + p["b"]
        y = (y - p["mean"]) / jnp.sqrt(p["var"] + eps) * p["gamma"] + p["beta"]
        x = jnp.where(y > 0, y, p["alpha"] * y)
    return x @ final_params["w"] + final_params["b"]


def decoder_forward_prepared_ref(x, prepared, n_genes):
    """Reference matching the kernel's numerics (folded BN, bf16 final weight)."""
    h = x
    for i, (w, b) in enumerate(prepared["hidden"]):
        y = jnp.dot(h, w, preferred_element_type=jnp.float32) + b
        a = prepared["alpha"][i]
        h = jnp.where(y > 0, y, a * y)
    wf = prepared["w_out"]
    y = jnp.dot(h.astype(wf.dtype), wf, preferred_element_type=jnp.float32)
    return (y + prepared["b_out"])[:, :n_genes]


# ----------------------------------------------------------------------------
# Parameter init (matches the PyTorch module's structure)
# ----------------------------------------------------------------------------
def init_decoder_params(key, n_genes, latent_dim, hidden_dim):
    params = []
    dims = [latent_dim] + list(hidden_dim)
    for i in range(len(hidden_dim)):
        key, kw, kb, kg, kbt, km, kv = jax.random.split(key, 7)
        fan_in, fan_out = dims[i], dims[i + 1]
        bound = 1.0 / jnp.sqrt(fan_in)
        params.append(dict(
            w=jax.random.uniform(kw, (fan_in, fan_out), jnp.float32, -bound, bound),
            b=jax.random.uniform(kb, (fan_out,), jnp.float32, -bound, bound),
            gamma=1.0 + 0.1 * jax.random.normal(kg, (fan_out,), jnp.float32),
            beta=0.1 * jax.random.normal(kbt, (fan_out,), jnp.float32),
            mean=0.1 * jax.random.normal(km, (fan_out,), jnp.float32),
            var=jax.random.uniform(kv, (fan_out,), jnp.float32, 0.5, 1.5),
            alpha=jnp.array(0.25, jnp.float32),   # nn.PReLU() default init
        ))
    key, kw, kb = jax.random.split(key, 3)
    fan_in = hidden_dim[-1]
    bound = 1.0 / jnp.sqrt(fan_in)
    final = dict(
        w=jax.random.uniform(kw, (fan_in, n_genes), jnp.float32, -bound, bound),
        b=jax.random.uniform(kb, (n_genes,), jnp.float32, -bound, bound),
    )
    return params, final


# ----------------------------------------------------------------------------
if __name__ == "__main__":
    # small, tile-friendly shapes consistent with the module; n_genes deliberately
    # NOT a multiple of 128 so the lane-padding path is exercised.
    batch = 8
    latent_dim = 128
    hidden_dim = [256, 256]
    n_genes = 1000

    key = jax.random.PRNGKey(0)
    key, kx = jax.random.split(key)
    x = jax.random.normal(kx, (batch, latent_dim), jnp.float32)

    hidden_params, final_params = init_decoder_params(
        key, n_genes, latent_dim, hidden_dim)

    # One-time preparation (fold BN, pad to 128, cast final W to bf16).
    prepared = prepare_decoder_params(hidden_params, final_params)

    fwd = jax.jit(lambda xx, pp: decoder_forward(xx, pp, n_genes=n_genes, tile_n=4096))
    out = jax.block_until_ready(fwd(x, prepared))

    ref_f32 = decoder_forward_ref(x, hidden_params, final_params)
    ref_matched = decoder_forward_prepared_ref(x, prepared, n_genes)

    assert out.shape == (batch, n_genes)
    assert jnp.allclose(out, ref_matched, atol=2e-2, rtol=2e-2), \
        "mismatch vs bf16-matched reference"
    assert jnp.allclose(out, ref_f32, atol=5e-2, rtol=5e-2), \
        "mismatch vs f32 reference"

    # Exercise a grid whose last column tile is partial (masked store path).
    fwd_small = jax.jit(lambda xx, pp: decoder_forward(xx, pp, n_genes=n_genes, tile_n=384))
    out2 = jax.block_until_ready(fwd_small(x, prepared))
    assert jnp.allclose(out2, out, atol=1e-5, rtol=1e-5), \
        "mismatch between full-tile and partial-tile runs"

    print("KERNEL_OK")
</pallas_src>

<mosaic_0001>
module attributes {stable_mosaic.version = 11 : i64} {
  func.func @_decoder_kernel(%arg0: i32, %arg1: memref<2xf32, #tpu.memory_space<smem>>, %arg2: memref<8x128xf32, #tpu.memory_space<vmem>>, %arg3: memref<128x256xf32, #tpu.memory_space<vmem>>, %arg4: memref<1x256xf32, #tpu.memory_space<vmem>>, %arg5: memref<256x256xf32, #tpu.memory_space<vmem>>, %arg6: memref<1x256xf32, #tpu.memory_space<vmem>>, %arg7: memref<256x1024xbf16, #tpu.memory_space<vmem>>, %arg8: memref<1x1024xf32, #tpu.memory_space<vmem>>, %arg9: memref<8x1024xf32, #tpu.memory_space<vmem>>) attributes {dimension_semantics = [#tpu.dimension_semantics<parallel>], iteration_bounds = array<i64: 1>, scalar_prefetch = 1 : i64, scratch_operands = 0 : i64, tpu.core_type = #tpu.core_type<tc>, window_params = [{pipeline_mode = #tpu.pipeline_mode<synchronous>, transform_indices = @transform_0, window_bounds = array<i64: 8, 128>}, {pipeline_mode = #tpu.pipeline_mode<synchronous>, transform_indices = @transform_1, window_bounds = array<i64: 128, 256>}, {pipeline_mode = #tpu.pipeline_mode<synchronous>, transform_indices = @transform_2, window_bounds = array<i64: 1, 256>}, {pipeline_mode = #tpu.pipeline_mode<synchronous>, transform_indices = @transform_3, window_bounds = array<i64: 256, 256>}, {pipeline_mode = #tpu.pipeline_mode<synchronous>, transform_indices = @transform_4, window_bounds = array<i64: 1, 256>}, {transform_indices = @transform_5, window_bounds = array<i64: 256, 1024>}, {transform_indices = @transform_6, window_bounds = array<i64: 1, 1024>}, {transform_indices = @transform_7, window_bounds = array<i64: 8, 1024>}]} {
    %c0 = arith.constant 0 : index
    %c0_0 = arith.constant 0 : index
    %0 = vector.load %arg2[%c0, %c0_0] : memref<8x128xf32, #tpu.memory_space<vmem>>, vector<8x128xf32>
    %c0_1 = arith.constant 0 : index
    %c0_2 = arith.constant 0 : index
    %1 = vector.load %arg3[%c0_1, %c0_2] : memref<128x256xf32, #tpu.memory_space<vmem>>, vector<128x256xf32>
    %c0_3 = arith.constant 0 : index
    %c0_4 = arith.constant 0 : index
    %2 = vector.load %arg4[%c0_3, %c0_4] : memref<1x256xf32, #tpu.memory_space<vmem>>, vector<1x256xf32>
    %cst = arith.constant dense<0.000000e+00> : vector<8x256xf32>
    %3 = tpu.matmul %0, %1, %cst {dimension_numbers = #tpu.dot_dimension_numbers<[1], [0], [0], [1], [0, 0, 1, 1], [], []>} : vector<8x128xf32>, vector<128x256xf32>, vector<8x256xf32> -> vector<8x256xf32>
    %4 = vector.broadcast %2 : vector<1x256xf32> to vector<8x256xf32>
    %5 = arith.addf %3, %4 : vector<8x256xf32>
    %c0_5 = arith.constant 0 : index
    %6 = memref.load %arg1[%c0_5] : memref<2xf32, #tpu.memory_space<smem>>
    %cst_6 = arith.constant 0.000000e+00 : f32
    %7 = vector.broadcast %cst_6 : f32 to vector<8x256xf32>
    %8 = arith.cmpf ogt, %5, %7 : vector<8x256xf32>
    %9 = vector.broadcast %6 : f32 to vector<8x256xf32>
    %10 = arith.mulf %9, %5 : vector<8x256xf32>
    %11 = arith.select %8, %5, %10 : vector<8x256xi1>, vector<8x256xf32>
    %c0_7 = arith.constant 0 : index
    %c0_8 = arith.constant 0 : index
    %12 = vector.load %arg5[%c0_7, %c0_8] : memref<256x256xf32, #tpu.memory_space<vmem>>, vector<256x256xf32>
    %c0_9 = arith.constant 0 : index
    %c0_10 = arith.constant 0 : index
    %13 = vector.load %arg6[%c0_9, %c0_10] : memref<1x256xf32, #tpu.memory_space<vmem>>, vector<1x256xf32>
    %cst_11 = arith.constant dense<0.000000e+00> : vector<8x256xf32>
    %14 = tpu.matmul %11, %12, %cst_11 {dimension_numbers = #tpu.dot_dimension_numbers<[1], [0], [0], [1], [0, 0, 1, 1], [], []>} : vector<8x256xf32>, vector<256x256xf32>, vector<8x256xf32> -> vector<8x256xf32>
    %15 = vector.broadcast %13 : vector<1x256xf32> to vector<8x256xf32>
    %16 = arith.addf %14, %15 : vector<8x256xf32>
    %c1 = arith.constant 1 : index
    %17 = memref.load %arg1[%c1] : memref<2xf32, #tpu.memory_space<smem>>
    %cst_12 = arith.constant 0.000000e+00 : f32
    %18 = vector.broadcast %cst_12 : f32 to vector<8x256xf32>
    %19 = arith.cmpf ogt, %16, %18 : vector<8x256xf32>
    %20 = vector.broadcast %17 : f32 to vector<8x256xf32>
    %21 = arith.mulf %20, %16 : vector<8x256xf32>
    %22 = arith.select %19, %16, %21 : vector<8x256xi1>, vector<8x256xf32>
    %c0_13 = arith.constant 0 : index
    %c0_14 = arith.constant 0 : index
    %23 = vector.load %arg7[%c0_13, %c0_14] : memref<256x1024xbf16, #tpu.memory_space<vmem>>, vector<256x1024xbf16>
    %24 = arith.truncf %22 : vector<8x256xf32> to vector<8x256xbf16>
    %cst_15 = arith.constant dense<0.000000e+00> : vector<8x1024xf32>
    %25 = tpu.matmul %24, %23, %cst_15 {dimension_numbers = #tpu.dot_dimension_numbers<[1], [0], [0], [1], [0, 0, 1, 1], [], []>} : vector<8x256xbf16>, vector<256x1024xbf16>, vector<8x1024xf32> -> vector<8x1024xf32>
    %c0_16 = arith.constant 0 : index
    %c0_17 = arith.constant 0 : index
    %26 = vector.load %arg8[%c0_16, %c0_17] : memref<1x1024xf32, #tpu.memory_space<vmem>>, vector<1x1024xf32>
    %27 = vector.broadcast %26 : vector<1x1024xf32> to vector<8x1024xf32>
    %28 = arith.addf %25, %27 : vector<8x1024xf32>
    %c0_18 = arith.constant 0 : index
    %c0_19 = arith.constant 0 : index
    %29 = vector.load %arg9[%c0_18, %c0_19] : memref<8x1024xf32, #tpu.memory_space<vmem>>, vector<8x1024xf32>
    tpu.vector_store %arg9[%c0_18, %c0_19], %28 {strides = array<i32>} : memref<8x1024xf32, #tpu.memory_space<vmem>>, vector<8x1024xf32>,
    return
  }
  func.func @transform_0(%arg0: i32, %arg1: memref<2xf32, #tpu.memory_space<smem>>) -> (i32, i32) {
    %c0_i32 = arith.constant 0 : i32
    %c0_i32_0 = arith.constant 0 : i32
    %c0_i32_1 = arith.constant 0 : i32
    return %c0_i32, %c0_i32_0 : i32, i32
  }
  func.func @transform_1(%arg0: i32, %arg1: memref<2xf32, #tpu.memory_space<smem>>) -> (i32, i32) {
    %c0_i32 = arith.constant 0 : i32
    %c0_i32_0 = arith.constant 0 : i32
    %c0_i32_1 = arith.constant 0 : i32
    return %c0_i32, %c0_i32_0 : i32, i32
  }
  func.func @transform_2(%arg0: i32, %arg1: memref<2xf32, #tpu.memory_space<smem>>) -> (i32, i32) {
    %c0_i32 = arith.constant 0 : i32
    %c0_i32_0 = arith.constant 0 : i32
    %c0_i32_1 = arith.constant 0 : i32
    return %c0_i32, %c0_i32_0 : i32, i32
  }
  func.func @transform_3(%arg0: i32, %arg1: memref<2xf32, #tpu.memory_space<smem>>) -> (i32, i32) {
    %c0_i32 = arith.constant 0 : i32
    %c0_i32_0 = arith.constant 0 : i32
    %c0_i32_1 = arith.constant 0 : i32
    return %c0_i32, %c0_i32_0 : i32, i32
  }
  func.func @transform_4(%arg0: i32, %arg1: memref<2xf32, #tpu.memory_space<smem>>) -> (i32, i32) {
    %c0_i32 = arith.constant 0 : i32
    %c0_i32_0 = arith.constant 0 : i32
    %c0_i32_1 = arith.constant 0 : i32
    return %c0_i32, %c0_i32_0 : i32, i32
  }
  func.func @transform_5(%arg0: i32, %arg1: memref<2xf32, #tpu.memory_space<smem>>) -> (i32, i32) {
    %c0_i32 = arith.constant 0 : i32
    %c0_i32_0 = arith.constant 0 : i32
    return %c0_i32, %arg0 : i32, i32
  }
  func.func @transform_6(%arg0: i32, %arg1: memref<2xf32, #tpu.memory_space<smem>>) -> (i32, i32) {
    %c0_i32 = arith.constant 0 : i32
    %c0_i32_0 = arith.constant 0 : i32
    return %c0_i32, %arg0 : i32, i32
  }
  func.func @transform_7(%arg0: i32, %arg1: memref<2xf32, #tpu.memory_space<smem>>) -> (i32, i32) {
    %c0_i32 = arith.constant 0 : i32
    %c0_i32_0 = arith.constant 0 : i32
    return %c0_i32, %arg0 : i32, i32
  }
}

</mosaic_0001>

<bundles_post_ra>
// kernel: _lambda_.1
= control target key start
LH: loop header
LB: loop body
LE: loop exit
PB: predicated region body
PF: predicated region fallthrough
CT: control target
= control target key end

     0   :  { %s1957_s0 = inlined_call_operand.vmem [shape: f32[2], index: 0, kind: input, shape index: {}]   ;;  %s1958_s1 = inlined_call_operand.hbm [shape: f32[8,128], index: 1, kind: input, shape index: {}]   ;;  %s1959_s2 = inlined_call_operand.hbm [shape: f32[128,256], index: 2, kind: input, shape index: {}]   ;;  %s1960_s3 = inlined_call_operand.vmem [shape: f32[1,256], index: 3, kind: input, shape index: {}]   ;;  %s1961_s4 = inlined_call_operand.hbm [shape: f32[256,256], index: 4, kind: input, shape index: {}]   ;;  %s1962_s5 = inlined_call_operand.vmem [shape: f32[1,256], index: 5, kind: input, shape index: {}]   ;;  %s1963_s6 = inlined_call_operand.hbm [shape: bf16[256,1024], index: 6, kind: input, shape index: {}]   ;;  %s1964_s7 = inlined_call_operand.hbm [shape: f32[1,1024], index: 7, kind: input, shape index: {}]   ;;  %s1965_s8 = inlined_call_operand.hbm [shape: f32[8,1024], index: 8, kind: output, shape index: {}]  }
   0x1   :  { %s13_s29 = sshll.u32 %s1957_s0, 4  ;;  %s14_s29 = int_to_ptr.vmem [resolvable:$true] %s13_s29 }
   0x2   :  { %s1615_s30 = scalar_lea.vmem %s14_s29, 16  ;;  %p1620_p1 = scmp.lt.s32.totalorder %s14_s29, %s14_s29 }
   0x3   :  { %p1616_p0 = scmp.ne.s32.totalorder %s14_s29, %s1615_s30  ;;  %p1621_p2 = scmp.lt.s32.totalorder %s1615_s30, %s1615_s30 }
   0x5   :  { %p1622_p3 = por %p1621_p2, %p1620_p1 }
   0x7   :  { %p1623_p4 = pnand %p1622_p3, %p1616_p0 }
   0x9   :  { %1626 = shalt.err (!%p1623_p4)  }
   0xa   :  { %s1769_s9 = smov [#allocation3]  }
   0xb   :  { %16 = dma.vmem_to_smem %s14_s29, 16, %s1769_s9, [#allocation2] }
   0xc   :  { %1759 = dma.done.wait [#allocation2], 16 }
   0xd   :  { %1760 = vsyncadd [#allocation2], 4294967280 }
   0xe   :  { %18 = sfence }
   0xf   :  { %19 = vsyncpa [#allocation5], 0 }
  0x10   :  { %20 = vsyncpa [#allocation8], 0 }
  0x11   :  { %21 = vsyncpa [#allocation11], 0 }
  0x12   :  { %22 = vsyncpa [#allocation6], 0  ;;  %s1770_s10 = smov [#allocation7]   ;;  %s1627_s13 = scalar_lea.hbm %s1959_s2, 4096 }
  0x13   :  { %s38_s11 = sshll.u32 %s1770_s10, 4  ;;  %p1628_p5 = scmp.ne.s32.totalorder %s1959_s2, %s1627_s13  ;;  %s39_s11 = int_to_ptr.vmem [resolvable:$true] %s38_s11 }
  0x14   :  { %p1631_p6 = scmp.lt.u32.totalorder %s1627_s13, %s1959_s2 }
  0x16   :  { %p1633_p7 = pnand %p1631_p6, %p1628_p5 }
  0x18   :  { %1636 = shalt.err (!%p1633_p7)
}
  0x19   :  { %s1637_s18 = scalar_lea.vmem %s39_s11, 4096  ;;  %p1642_p9 = scmp.lt.s32.totalorder %s39_s11, %s39_s11 }
  0x1a   :  { %p1638_p8 = scmp.ne.s32.totalorder %s39_s11, %s1637_s18  ;;  %p1643_p10 = scmp.lt.s32.totalorder %s1637_s18, %s1637_s18 }
  0x1c   :  { %p1644_p11 = por %p1643_p10, %p1642_p9 }
  0x1e   :  { %p1645_p12 = pnand %p1644_p11, %p1638_p8 }
  0x20   :  { %1648 = shalt.err (!%p1645_p12)
}
  0x21   :  { %s1771_s19 = smov 256   ;;  %s1772_s20 = smov 16  }
  0x22   :  { %44 = dma.hbm_to_vmem [thread:$0]  %s1959_s2, 4096, %s39_s11, [#allocation8], %s1771_s19, %s1771_s19, %s1772_s20  }
  0x23   :  { %s1773_s23 = smov [#allocation10]   ;;  %s1649_s27 = scalar_lea.hbm %s1963_s6, 16384 }
  0x24   :  { %s66_s24 = sshll.u32 %s1773_s23, 4  ;;  %p1650_p13 = scmp.ne.s32.totalorder %s1963_s6, %s1649_s27  ;;  %s67_s24 = int_to_ptr.vmem [resolvable:$true] %s66_s24 }
  0x25   :  { %p1653_p0 = scmp.lt.u32.totalorder %s1649_s27, %s1963_s6 }
  0x27   :  { %p1655_p1 = pnand %p1653_p0, %p1650_p13 }
  0x29   :  { %1658 = shalt.err (!%p1655_p1)
}
  0x2a   :  { %s1659_s10 = scalar_lea.vmem %s67_s24, 16384  ;;  %p1664_p3 = scmp.lt.s32.totalorder %s67_s24, %s67_s24 }
  0x2b   :  { %p1660_p2 = scmp.ne.s32.totalorder %s67_s24, %s1659_s10  ;;  %p1665_p4 = scmp.lt.s32.totalorder %s1659_s10, %s1659_s10 }
  0x2d   :  { %p1666_p5 = por %p1665_p4, %p1664_p3 }
  0x2f   :  { %p1667_p6 = pnand %p1666_p5, %p1660_p2 }
  0x31   :  { %1670 = shalt.err (!%p1667_p6)
}
  0x32   :  { %s1774_s2 = smov 512   ;;  %s1775_s11 = smov 32  }
  0x33   :  { %72 = dma.hbm_to_vmem [thread:$0]  %s1963_s6, 16384, %s67_s24, [#allocation11], %s1774_s2, %s1774_s2, %s1775_s11  }
  0x34   :  { %s1776_s13 = smov [#allocation4]   ;;  %s1777_s15 = smov [#allocation9]  }
  0x35   :  { %s29_s14 = sshll.u32 %s1776_s13, 4  ;;  %s52_s16 = sshll.u32 %s1777_s15, 4  ;;  %s30_s14 = int_to_ptr.vmem [resolvable:$true] %s29_s14  ;;  %s1856_s16 = int_to_ptr.vmem [resolvable:$true] %s52_s16 }
  0x36   :  { %s1671_s21 = scalar_lea.hbm %s1958_s1, 128 }
  0x37   :  { %p1672_p7 = scmp.ne.s32.totalorder %s1958_s1, %s1671_s21  ;;  %p1675_p8 = scmp.lt.u32.totalorder %s1671_s21, %s1958_s1 }
  0x39   :  { %p1677_p9 = pnand %p1675_p8, %p1672_p7 }
  0x3b   :  { %1680 = shalt.err (!%p1677_p9)
}
  0x3c   :  { %s1681_s6 = scalar_lea.vmem %s30_s14, 128  ;;  %p1686_p11 = scmp.lt.s32.totalorder %s30_s14, %s30_s14 }
  0x3d   :  { %p1682_p10 = scmp.ne.s32.totalorder %s30_s14, %s1681_s6  ;;  %p1687_p12 = scmp.lt.s32.totalorder %s1681_s6, %s1681_s6 }
  0x3f   :  { %p1688_p13 = por %p1687_p12, %p1686_p11 }
  0x41   :  { %p1689_p0 = pnand %p1688_p13, %p1682_p10 }
  0x43   :  { %1692 = shalt.err (!%p1689_p0)
}
  0x44   :  { %32 = dma.hbm_to_vmem [thread:$0]  %s1958_s1, 128, %s30_s14, [#allocation5]  }
  0x45   :  { %s1693_s30 = scalar_lea.hbm %s1961_s4, 8192 }
  0x46   :  { %p1694_p1 = scmp.ne.s32.totalorder %s1961_s4, %s1693_s30  ;;  %p1697_p2 = scmp.lt.u32.totalorder %s1693_s30, %s1961_s4 }
  0x48   :  { %p1699_p3 = pnand %p1697_p2, %p1694_p1 }
  0x4a   :  { %1702 = shalt.err (!%p1699_p3)
}
  0x4b   :  { %s1703_s0 = scalar_lea.vmem %s1856_s16, 8192  ;;  %p1708_p5 = scmp.lt.s32.totalorder %s1856_s16, %s1856_s16 }
  0x4c   :  { %p1704_p4 = scmp.ne.s32.totalorder %s1856_s16, %s1703_s0  ;;  %p1709_p6 = scmp.lt.s32.totalorder %s1703_s0, %s1703_s0 }
  0x4e   :  { %p1710_p7 = por %p1709_p6, %p1708_p5 }
  0x50   :  { %p1711_p8 = pnand %p1710_p7, %p1704_p4 }
  0x52   :  { %1714 = shalt.err (!%p1711_p8)
}
  0x53   :  { %58 = dma.hbm_to_vmem [thread:$0]  %s1961_s4, 8192, %s1856_s16, [#allocation8], %s1771_s19, %s1771_s19, %s1772_s20  }
  0x54   :  { %s1778_s13 = smov [#allocation12]   ;;  %s1715_s18 = scalar_lea.hbm %s1964_s7, 128 }
  0x55   :  { %s79_s14 = sshll.u32 %s1778_s13, 4  ;;  %p1716_p9 = scmp.ne.s32.totalorder %s1964_s7, %s1715_s18  ;;  %s80_s14 = int_to_ptr.vmem [resolvable:$true] %s79_s14 }
  0x56   :  { %p1719_p10 = scmp.lt.u32.totalorder %s1715_s18, %s1964_s7 }
  0x58   :  { %p1721_p11 = pnand %p1719_p10, %p1716_p9 }
  0x5a   :  { %1724 = shalt.err (!%p1721_p11)
}
  0x5b   :  { %s1725_s26 = scalar_lea.vmem %s80_s14, 128  ;;  %p1730_p13 = scmp.lt.s32.totalorder %s80_s14, %s80_s14 }
  0x5c   :  { %p1726_p12 = scmp.ne.s32.totalorder %s80_s14, %s1725_s26  ;;  %p1731_p0 = scmp.lt.s32.totalorder %s1725_s26, %s1725_s26 }
  0x5e   :  { %p1732_p1 = por %p1731_p0, %p1730_p13 }
  0x60   :  { %p1733_p2 = pnand %p1732_p1, %p1726_p12 }
  0x62   :  { %1736 = shalt.err (!%p1733_p2)
}
  0x63   :  { %82 = dma.hbm_to_vmem [thread:$0]  %s1964_s7, 128, %s80_s14, [#allocation11]  }
  0x64   :  { %1761 = dma.done.wait [#allocation5], 128  }
  0x65   :  { %1762 = vsyncadd [#allocation5], 4294967168 }
  0x66   :  { %1763 = dma.done.wait [#allocation8], 12288  }
  0x67   :  { %1764 = vsyncadd [#allocation8], 4294955008 }
  0x68   :  { %1765 = dma.done.wait [#allocation11], 16512  }
  0x69   :  { %1766 = vsyncadd [#allocation11], 4294950784  ;;  %v1779_v0 = vmov 0.0   ;;  %v100_v1 = vld [vmem:[#allocation7 + $0x8] sm:$0xff]  ;;  %v102_v2 = vld [vmem:[#allocation7 + $0x18] sm:$0xff]  ;;  %s214_s7 = sld [smem:[#allocation3]] }
  0x6a   :  { %207 = vmatprep.mubr.f32.mxu0 %v1779_v0  ;;  %v99_v3 = vld [vmem:[#allocation7] sm:$0xff]  ;;  %v1507_v4 = vpack.c.bf16 %v102_v2, %v100_v1  ;;  %v101_v5 = vld [vmem:[#allocation7 + $0x10] sm:$0xff]  ;;  %v104_v6 = vld [vmem:[#allocation7 + $0x28] sm:$0xff] }
  0x6b   :  { %v106_v7 = vld [vmem:[#allocation7 + $0x38] sm:$0xff]  ;;  %v1509_v8 = vpack.c.bf16 %v101_v5, %v99_v3  ;;  %v103_v10 = vld [vmem:[#allocation7 + $0x20] sm:$0xff]  ;;  %v105_v11 = vld [vmem:[#allocation7 + $0x30] sm:$0xff] }
  0x6c   :  { %v1511_v9 = vpack.c.bf16 %v106_v7, %v104_v6  ;;  %v108_v12 = vld [vmem:[#allocation7 + $0x48] sm:$0xff]  ;;  %1508 = vmatprep.subr.bf16.mxu0 %v1507_v4  ;;  %v110_v13 = vld [vmem:[#allocation7 + $0x58] sm:$0xff]  ;;  %v1513_v14 = vpack.c.bf16 %v105_v11, %v103_v10  ;;  %v107_v16 = vld [vmem:[#allocation7 + $0x40] sm:$0xff] }
  0x6d   :  { %1510 = vmatpush1.bf16.msra.mxu0 %v1509_v8  ;;  %v1515_v15 = vpack.c.bf16 %v110_v13, %v108_v12  ;;  %v109_v17 = vld [vmem:[#allocation7 + $0x50] sm:$0xff]  ;;  %v112_v18 = vld [vmem:[#allocation7 + $0x68] sm:$0xff]  ;;  %v114_v19 = vld [vmem:[#allocation7 + $0x78] sm:$0xff] }
  0x6e   :  { %1512 = vmatprep.subr.bf16.mxu0 %v1511_v9  ;;  %v1517_v20 = vpack.c.bf16 %v109_v17, %v107_v16  ;;  %v1519_v21 = vpack.c.bf16 %v114_v19, %v112_v18  ;;  %v111_v22 = vld [vmem:[#allocation7 + $0x60] sm:$0xff]  ;;  %v113_v23 = vld [vmem:[#allocation7 + $0x70] sm:$0xff]  ;;  %v116_v24 = vld [vmem:[#allocation7 + $0x88] sm:$0xff] }
  0x6f   :  { %v118_v25 = vld [vmem:[#allocation7 + $0x98] sm:$0xff]  ;;  %v115_v26 = vld [vmem:[#allocation7 + $0x80] sm:$0xff]  ;;  %v117_v27 = vld [vmem:[#allocation7 + $0x90] sm:$0xff]  ;;  %v1521_v31 = vpack.c.bf16 %v113_v23, %v111_v22 }
  0x70   :  { %v223_v28 = vld [vmem:[#allocation9 + $0x8] sm:$0xff]  ;;  %v225_v29 = vld [vmem:[#allocation9 + $0x18] sm:$0xff]  ;;  %v222_v30 = vld [vmem:[#allocation9] sm:$0xff]  ;;  %v1523_v36 = vpack.c.bf16 %v118_v25, %v116_v24  ;;  %v1525_v46 = vpack.c.bf16 %v117_v27, %v115_v26 }
  0x71   :  { %1514 = vmatpush1.bf16.msra.mxu0 %v1513_v14  ;;  %v1539_v32 = vpack.c.bf16 %v225_v29, %v223_v28  ;;  %v224_v33 = vld [vmem:[#allocation9 + $0x10] sm:$0xff]  ;;  %v227_v34 = vld [vmem:[#allocation9 + $0x28] sm:$0xff]  ;;  %v229_v35 = vld [vmem:[#allocation9 + $0x38] sm:$0xff] }
  0x72   :  { %1516 = vmatprep.subr.bf16.mxu0 %v1515_v15  ;;  %v1541_v37 = vpack.c.bf16 %v224_v33, %v222_v30  ;;  %v1543_v38 = vpack.c.bf16 %v229_v35, %v227_v34  ;;  %v226_v39 = vld [vmem:[#allocation9 + $0x20] sm:$0xff]  ;;  %v228_v40 = vld [vmem:[#allocation9 + $0x30] sm:$0xff]  ;;  %v231_v41 = vld [vmem:[#allocation9 + $0x48] sm:$0xff] }
  0x73   :  { %v120_v42 = vld [vmem:[#allocation7 + $0xa8] sm:$0xff]  ;;  %v122_v43 = vld [vmem:[#allocation7 + $0xb8] sm:$0xff]  ;;  %1540 = vmatprep.subr.bf16.mxu1 %v1539_v32  ;;  %v1545_v45 = vpack.c.bf16 %v228_v40, %v226_v39  ;;  %v119_v47 = vld [vmem:[#allocation7 + $0xa0] sm:$0xff] }
  0x74   :  { %v233_v44 = vld [vmem:[#allocation9 + $0x58] sm:$0xff]  ;;  %1542 = vmatpush1.bf16.msra.mxu1 %v1541_v37  ;;  %v230_v49 = vld [vmem:[#allocation9 + $0x40] sm:$0xff]  ;;  %v232_v50 = vld [vmem:[#allocation9 + $0x50] sm:$0xff]  ;;  %v1527_v51 = vpack.c.bf16 %v122_v43, %v120_v42 }
  0x75   :  { %1518 = vmatpush1.bf16.msra.mxu0 %v1517_v20  ;;  %1544 = vmatprep.subr.bf16.mxu1 %v1543_v38  ;;  %v1547_v48 = vpack.c.bf16 %v233_v44, %v231_v41  ;;  %v121_v52 = vld [vmem:[#allocation7 + $0xb0] sm:$0xff]  ;;  %v235_v53 = vld [vmem:[#allocation9 + $0x68] sm:$0xff]  ;;  %v237_v54 = vld [vmem:[#allocation9 + $0x78] sm:$0xff]  ;;  %v1549_v57 = vpack.c.bf16 %v232_v50, %v230_v49 }
  0x76   :  { %1520 = vmatprep.subr.bf16.mxu0 %v1519_v21  ;;  %v124_v55 = vld [vmem:[#allocation7 + $0xc8] sm:$0xff]  ;;  %v126_v56 = vld [vmem:[#allocation7 + $0xd8] sm:$0xff]  ;;  %v1529_v58 = vpack.c.bf16 %v121_v52, %v119_v47  ;;  %v123_v59 = vld [vmem:[#allocation7 + $0xc0] sm:$0xff]  ;;  %v1551_v60 = vpack.c.bf16 %v237_v54, %v235_v53 }
  0x77   :  { %v234_v61 = vld [vmem:[#allocation9 + $0x60] sm:$0xff]  ;;  %v236_v62 = vld [vmem:[#allocation9 + $0x70] sm:$0xff]  ;;  %v1531_v63 = vpack.c.bf16 %v126_v56, %v124_v55  ;;  %v239_v1 = vld [vmem:[#allocation9 + $0x88] sm:$0xff] }
  0x78   :  { %1546 = vmatpush1.bf16.msra.mxu1 %v1545_v45  ;;  %v125_v0 = vld [vmem:[#allocation7 + $0xd0] sm:$0xff]  ;;  %v241_v2 = vld [vmem:[#allocation9 + $0x98] sm:$0xff]  ;;  %v128_v3 = vld [vmem:[#allocation7 + $0xe8] sm:$0xff]  ;;  %v1553_v5 = vpack.c.bf16 %v236_v62, %v234_v61 }
  0x79   :  { %1522 = vmatpush1.bf16.msra.mxu0 %v1521_v31  ;;  %1548 = vmatprep.subr.bf16.mxu1 %v1547_v48  ;;  %v130_v4 = vld [vmem:[#allocation7 + $0xf8] sm:$0xff]  ;;  %v1533_v6 = vpack.c.bf16 %v125_v0, %v123_v59  ;;  %v127_v7 = vld [vmem:[#allocation7 + $0xe0] sm:$0xff]  ;;  %v1555_v8 = vpack.c.bf16 %v241_v2, %v239_v1  ;;  %v240_v10 = vld [vmem:[#allocation9 + $0x90] sm:$0xff] }
  0x7a   :  { %1524 = vmatprep.subr.bf16.mxu0 %v1523_v36  ;;  %v238_v9 = vld [vmem:[#allocation9 + $0x80] sm:$0xff]  ;;  %v1535_v11 = vpack.c.bf16 %v130_v4, %v128_v3  ;;  %v129_v12 = vld [vmem:[#allocation7 + $0xf0] sm:$0xff]  ;;  %v243_v13 = vld [vmem:[#allocation9 + $0xa8] sm:$0xff] }
  0x7b   :  { %v245_v14 = vld [vmem:[#allocation9 + $0xb8] sm:$0xff]  ;;  %v1557_v15 = vpack.c.bf16 %v240_v10, %v238_v9  ;;  %v1537_v16 = vpack.c.bf16 %v129_v12, %v127_v7  ;;  %v242_v18 = vld [vmem:[#allocation9 + $0xa0] sm:$0xff]  ;;  %v244_v19 = vld [vmem:[#allocation9 + $0xb0] sm:$0xff] }
  0x7c   :  { %1550 = vmatpush1.bf16.msra.mxu1 %v1549_v57  ;;  %v1559_v17 = vpack.c.bf16 %v245_v14, %v243_v13  ;;  %v247_v20 = vld [vmem:[#allocation9 + $0xc8] sm:$0xff]  ;;  %v249_v21 = vld [vmem:[#allocation9 + $0xd8] sm:$0xff]  ;;  %v1561_v22 = vpack.c.bf16 %v244_v19, %v242_v18  ;;  %v246_v25 = vld [vmem:[#allocation9 + $0xc0] sm:$0xff] }
  0x7d   :  { %1526 = vmatpush1.bf16.msra.mxu0 %v1525_v46  ;;  %1552 = vmatprep.subr.bf16.mxu1 %v1551_v60  ;;  %v98_v23 = vld [vmem:[#allocation4] sm:$0xff]  ;;  %v1563_v24 = vpack.c.bf16 %v249_v21, %v247_v20  ;;  %v248_v26 = vld [vmem:[#allocation9 + $0xd0] sm:$0xff]  ;;  %v251_v27 = vld [vmem:[#allocation9 + $0xe8] sm:$0xff] }
  0x7e   :  { %1528 = vmatprep.subr.bf16.mxu0 %v1527_v51  ;;  %v253_v28 = vld [vmem:[#allocation9 + $0xf8] sm:$0xff]  ;;  %v1565_v29 = vpack.c.bf16 %v248_v26, %v246_v25  ;;  %v250_v31 = vld [vmem:[#allocation9 + $0xe0] sm:$0xff]  ;;  %v252_v32 = vld [vmem:[#allocation9 + $0xf0] sm:$0xff] }
  0x7f   :  { %v1567_v30 = vpack.c.bf16 %v253_v28, %v251_v27  ;;  %v255_v33 = vld [vmem:[#allocation9 + $0x108] sm:$0xff]  ;;  %v257_v34 = vld [vmem:[#allocation9 + $0x118] sm:$0xff]  ;;  %v1569_v35 = vpack.c.bf16 %v252_v32, %v250_v31  ;;  %v254_v37 = vld [vmem:[#allocation9 + $0x100] sm:$0xff] }
  0x80   :  { %1554 = vmatpush1.bf16.msra.mxu1 %v1553_v5  ;;  %v1571_v36 = vpack.c.bf16 %v257_v34, %v255_v33  ;;  %v256_v38 = vld [vmem:[#allocation9 + $0x110] sm:$0xff]  ;;  %v259_v39 = vld [vmem:[#allocation9 + $0x128] sm:$0xff]  ;;  %v261_v40 = vld [vmem:[#allocation9 + $0x138] sm:$0xff] }
  0x81   :  { %1530 = vmatpush1.bf16.msra.mxu0 %v1529_v58  ;;  %1556 = vmatprep.subr.bf16.mxu1 %v1555_v8  ;;  %v1573_v41 = vpack.c.bf16 %v256_v38, %v254_v37  ;;  %v1575_v42 = vpack.c.bf16 %v261_v40, %v259_v39  ;;  %v258_v43 = vld [vmem:[#allocation9 + $0x120] sm:$0xff]  ;;  %v260_v44 = vld [vmem:[#allocation9 + $0x130] sm:$0xff]  ;;  %v263_v45 = vld [vmem:[#allocation9 + $0x148] sm:$0xff] }
  0x82   :  { %1532 = vmatprep.subr.bf16.mxu0 %v1531_v63  ;;  %v265_v46 = vld [vmem:[#allocation9 + $0x158] sm:$0xff]  ;;  %v1577_v47 = vpack.c.bf16 %v260_v44, %v258_v43  ;;  %v262_v49 = vld [vmem:[#allocation9 + $0x140] sm:$0xff]  ;;  %v264_v50 = vld [vmem:[#allocation9 + $0x150] sm:$0xff] }
  0x83   :  { %v1579_v48 = vpack.c.bf16 %v265_v46, %v263_v45  ;;  %v267_v51 = vld [vmem:[#allocation9 + $0x168] sm:$0xff]  ;;  %v269_v52 = vld [vmem:[#allocation9 + $0x178] sm:$0xff]  ;;  %v1581_v53 = vpack.c.bf16 %v264_v50, %v262_v49  ;;  %v266_v55 = vld [vmem:[#allocation9 + $0x160] sm:$0xff] }
  0x84   :  { %1558 = vmatpush1.bf16.msra.mxu1 %v1557_v15  ;;  %v1583_v54 = vpack.c.bf16 %v269_v52, %v267_v51  ;;  %v268_v56 = vld [vmem:[#allocation9 + $0x170] sm:$0xff]  ;;  %v271_v57 = vld [vmem:[#allocation9 + $0x188] sm:$0xff]  ;;  %v273_v58 = vld [vmem:[#allocation9 + $0x198] sm:$0xff] }
  0x85   :  { %1534 = vmatpush1.bf16.msra.mxu0 %v1533_v6  ;;  %1560 = vmatprep.subr.bf16.mxu1 %v1559_v17  ;;  %v1585_v59 = vpack.c.bf16 %v268_v56, %v266_v55  ;;  %v1587_v60 = vpack.c.bf16 %v273_v58, %v271_v57  ;;  %v270_v61 = vld [vmem:[#allocation9 + $0x180] sm:$0xff]  ;;  %v272_v62 = vld [vmem:[#allocation9 + $0x190] sm:$0xff]  ;;  %v275_v63 = vld [vmem:[#allocation9 + $0x1a8] sm:$0xff] }
  0x86   :  { %1536 = vmatprep.subr.bf16.mxu0 %v1535_v11  ;;  %v277_v0 = vld [vmem:[#allocation9 + $0x1b8] sm:$0xff]  ;;  %v1589_v1 = vpack.c.bf16 %v272_v62, %v270_v61  ;;  %v274_v3 = vld [vmem:[#allocation9 + $0x1a0] sm:$0xff]  ;;  %v276_v4 = vld [vmem:[#allocation9 + $0x1b0] sm:$0xff] }
  0x87   :  { %v1591_v2 = vpack.c.bf16 %v277_v0, %v275_v63  ;;  %v1593_v5 = vpack.c.bf16 %v276_v4, %v274_v3  ;;  %v279_v6 = vld [vmem:[#allocation9 + $0x1c8] sm:$0xff]  ;;  %v281_v7 = vld [vmem:[#allocation9 + $0x1d8] sm:$0xff]  ;;  %v278_v9 = vld [vmem:[#allocation9 + $0x1c0] sm:$0xff] }
  0x88   :  { %1562 = vmatpush1.bf16.msra.mxu1 %v1561_v22  ;;  %v1595_v8 = vpack.c.bf16 %v281_v7, %v279_v6  ;;  %v280_v10 = vld [vmem:[#allocation9 + $0x1d0] sm:$0xff]  ;;  %v283_v12 = vld [vmem:[#allocation9 + $0x1e8] sm:$0xff]  ;;  %v285_v13 = vld [vmem:[#allocation9 + $0x1f8] sm:$0xff] }
  0x89   :  { %1538 = vmatpush1.bf16.msra.mxu0 %v1537_v16  ;;  %1564 = vmatprep.subr.bf16.mxu1 %v1563_v24  ;;  %v1597_v11 = vpack.c.bf16 %v280_v10, %v278_v9  ;;  %v1599_v14 = vpack.c.bf16 %v285_v13, %v283_v12  ;;  %v282_v15 = vld [vmem:[#allocation9 + $0x1e0] sm:$0xff]  ;;  %v284_v16 = vld [vmem:[#allocation9 + $0x1f0] sm:$0xff]  ;;  %v1902_v20 = vld [vmem:[#allocation10 + $0x8] sm:$0xff] }
  0x8a   :  { %v1601_v17 = vpack.c.bf16 %v284_v16, %v282_v15  ;;  %v377_v18 = vld [vmem:[#allocation10] sm:$0xff] }
  0x8b   :  { %v381_v19 = vld [vmem:[#allocation10 + $0x20] sm:$0xff] }
  0x8c   :  { %208 = vmatmul.mubr.f32.vlgmr.msra.gmra.mrb[0].mxu0 %v98_v23  ;;  %1566 = vmatpush1.bf16.msra.mxu1 %v1565_v29  ;;  %v1379_v21 = vcombine.low %v377_v18, %v381_v19  ;;  %v1380_v22 = vcombine.high %v377_v18, %v381_v19  ;;  %v1904_v23 = vld [vmem:[#allocation10 + $0x28] sm:$0xff]  ;;  %v385_v24 = vld [vmem:[#allocation10 + $0x40] sm:$0xff] }
  0x8d   :  { %1568 = vmatprep.subr.bf16.mxu1 %v1567_v30  ;;  %v389_v25 = vld [vmem:[#allocation10 + $0x60] sm:$0xff]  ;;  %v1381_v26 = vcombine.low %v1902_v20, %v1904_v23  ;;  %v1382_v27 = vcombine.high %v1902_v20, %v1904_v23 }
  0x8e   :  { %v1388_v28 = vcombine.high %v385_v24, %v389_v25  ;;  %1189 = vmatprep.subr.bf16.mxu0 %v1380_v22  ;;  %v1387_v29 = vcombine.low %v385_v24, %v389_v25  ;;  %v393_v30 = vld [vmem:[#allocation10 + $0x80] sm:$0xff]  ;;  %v217_v24 = vstv %s214_s7 }
  0x8f   :  { %1190 = vmatpush1.bf16.msra.mxu0 %v1379_v21  ;;  %v397_v31 = vld [vmem:[#allocation10 + $0xa0] sm:$0xff] }
  0x90   :  { %1570 = vmatpush1.bf16.msra.mxu1 %v1569_v35  ;;  %1191 = vmatprep.subr.bf16.mxu0 %v1388_v28  ;;  %v1396_v32 = vcombine.high %v393_v30, %v397_v31  ;;  %v1395_v33 = vcombine.low %v393_v30, %v397_v31  ;;  %v401_v34 = vld [vmem:[#allocation10 + $0xc0] sm:$0xff]  ;;  %v386_v30 = vld [vmem:[#allocation10 + $0x48] sm:$0xff] }
  0x91   :  { %1572 = vmatprep.subr.bf16.mxu1 %v1571_v36  ;;  %v405_v35 = vld [vmem:[#allocation10 + $0xe0] sm:$0xff]  ;;  %v390_v31 = vld [vmem:[#allocation10 + $0x68] sm:$0xff] }
  0x92   :  { %v1404_v36 = vcombine.high %v401_v34, %v405_v35  ;;  %v1403_v37 = vcombine.low %v401_v34, %v405_v35  ;;  %v409_v38 = vld [vmem:[#allocation10 + $0x100] sm:$0xff]  ;;  %v1390_v34 = vcombine.high %v386_v30, %v390_v31 }
  0x93   :  { %1192 = vmatpush1.bf16.msra.mxu0 %v1387_v29  ;;  %v413_v39 = vld [vmem:[#allocation10 + $0x120] sm:$0xff] }
  0x94   :  { %1574 = vmatpush1.bf16.msra.mxu1 %v1573_v41  ;;  %1193 = vmatprep.subr.bf16.mxu0 %v1396_v32  ;;  %v1412_v40 = vcombine.high %v409_v38, %v413_v39  ;;  %v1411_v41 = vcombine.low %v409_v38, %v413_v39  ;;  %v421_v43 = vld [vmem:[#allocation10 + $0x160] sm:$0xff]  ;;  %v1389_v38 = vcombine.low %v386_v30, %v390_v31 }
  0x95   :  { %1576 = vmatprep.subr.bf16.mxu1 %v1575_v42  ;;  %v417_v42 = vld [vmem:[#allocation10 + $0x140] sm:$0xff] }
  0x96   :  { %v1420_v44 = vcombine.high %v417_v42, %v421_v43  ;;  %v1419_v45 = vcombine.low %v417_v42, %v421_v43  ;;  %v425_v46 = vld [vmem:[#allocation10 + $0x180] sm:$0xff] }
  0x97   :  { %1194 = vmatpush1.bf16.msra.mxu0 %v1395_v33  ;;  %v433_v50 = vld [vmem:[#allocation10 + $0x1c0] sm:$0xff] }
  0x98   :  { %1578 = vmatpush1.bf16.msra.mxu1 %v1577_v47  ;;  %1195 = vmatprep.subr.bf16.mxu0 %v1404_v36  ;;  %v429_v47 = vld [vmem:[#allocation10 + $0x1a0] sm:$0xff]  ;;  %v394_v36 = vld [vmem:[#allocation10 + $0x88] sm:$0xff] }
  0x99   :  { %1580 = vmatprep.subr.bf16.mxu1 %v1579_v48  ;;  %v1428_v48 = vcombine.high %v425_v46, %v429_v47  ;;  %v1427_v49 = vcombine.low %v425_v46, %v429_v47  ;;  %v437_v51 = vld [vmem:[#allocation10 + $0x1e0] sm:$0xff] }
  0x9a   :  { %v1436_v52 = vcombine.high %v433_v50, %v437_v51  ;;  %v445_v55 = vld [vmem:[#allocation10 + $0x220] sm:$0xff] }
  0x9b   :  { %1196 = vmatpush1.bf16.msra.mxu0 %v1403_v37  ;;  %v449_v58 = vld [vmem:[#allocation10 + $0x240] sm:$0xff]  ;;  %v398_v37 = vld [vmem:[#allocation10 + $0xa8] sm:$0xff] }
  0x9c   :  { %1582 = vmatpush1.bf16.msra.mxu1 %v1581_v53  ;;  %1197 = vmatprep.subr.bf16.mxu0 %v1412_v40  ;;  %v1435_v53 = vcombine.low %v433_v50, %v437_v51  ;;  %v457_v62 = vld [vmem:[#allocation10 + $0x280] sm:$0xff]  ;;  %v1398_v39 = vcombine.high %v394_v36, %v398_v37  ;;  %v402_v40 = vld [vmem:[#allocation10 + $0xc8] sm:$0xff]  ;;  %v1397_v42 = vcombine.low %v394_v36, %v398_v37 }
  0x9d   :  { %1584 = vmatprep.subr.bf16.mxu1 %v1583_v54  ;;  %v441_v54 = vld [vmem:[#allocation10 + $0x200] sm:$0xff]  ;;  %v430_v50 = vld [vmem:[#allocation10 + $0x1a8] sm:$0xff] }
  0x9e   :  { %v1444_v56 = vcombine.high %v441_v54, %v445_v55  ;;  %v1443_v57 = vcombine.low %v441_v54, %v445_v55  ;;  %v461_v63 = vld [vmem:[#allocation10 + $0x2a0] sm:$0xff]  ;;  %v438_v54 = vld [vmem:[#allocation10 + $0x1e8] sm:$0xff] }
  0x9f   :  { %1198 = vmatpush1.bf16.msra.mxu0 %v1411_v41  ;;  %v1460_v0 = vcombine.high %v457_v62, %v461_v63  ;;  %v469_v3 = vld [vmem:[#allocation10 + $0x2e0] sm:$0xff]  ;;  %v406_v41 = vld [vmem:[#allocation10 + $0xe8] sm:$0xff] }
  0xa0   :  { %1586 = vmatpush1.bf16.msra.mxu1 %v1585_v59  ;;  %1199 = vmatprep.subr.bf16.mxu0 %v1420_v44  ;;  %v453_v59 = vld [vmem:[#allocation10 + $0x260] sm:$0xff]  ;;  %v1406_v43 = vcombine.high %v402_v40, %v406_v41  ;;  %v410_v44 = vld [vmem:[#allocation10 + $0x108] sm:$0xff]  ;;  %v1405_v46 = vcombine.low %v402_v40, %v406_v41  ;;  %v379_v40 = vld [vmem:[#allocation10 + $0x10] sm:$0xff] }
  0xa1   :  { %1588 = vmatprep.subr.bf16.mxu1 %v1587_v60  ;;  %v1452_v60 = vcombine.high %v449_v58, %v453_v59  ;;  %v1451_v61 = vcombine.low %v449_v58, %v453_v59  ;;  %v473_v6 = vld [vmem:[#allocation10 + $0x300] sm:$0xff]  ;;  %v446_v58 = vld [vmem:[#allocation10 + $0x228] sm:$0xff]  ;;  %v383_v41 = vld [vmem:[#allocation10 + $0x30] sm:$0xff] }
  0xa2   :  { %v477_v7 = vld [vmem:[#allocation10 + $0x320] sm:$0xff]  ;;  %v502_v36 = vld [vmem:[#allocation10 + $0x3e8] sm:$0xff] }
  0xa3   :  { %1200 = vmatpush1.bf16.msra.mxu0 %v1419_v45  ;;  %v1475_v9 = vcombine.low %v473_v6, %v477_v7  ;;  %v481_v10 = vld [vmem:[#allocation10 + $0x340] sm:$0xff]  ;;  %v414_v45 = vld [vmem:[#allocation10 + $0x128] sm:$0xff] }
  0xa4   :  { %1590 = vmatpush1.bf16.msra.mxu1 %v1589_v1  ;;  %1201 = vmatprep.subr.bf16.mxu0 %v1428_v48  ;;  %v1459_v1 = vcombine.low %v457_v62, %v461_v63  ;;  %v1414_v47 = vcombine.high %v410_v44, %v414_v45  ;;  %v418_v48 = vld [vmem:[#allocation10 + $0x148] sm:$0xff]  ;;  %v1413_v20 = vcombine.low %v410_v44, %v414_v45  ;;  %v384_v44 = vld [vmem:[#allocation10 + $0x38] sm:$0xff] }
  0xa5   :  { %1592 = vmatprep.subr.bf16.mxu1 %v1591_v2  ;;  %v465_v2 = vld [vmem:[#allocation10 + $0x2c0] sm:$0xff]  ;;  %v454_v62 = vld [vmem:[#allocation10 + $0x268] sm:$0xff]  ;;  %v1383_v45 = vcombine.low %v379_v40, %v383_v41 }
  0xa6   :  { %v1468_v4 = vcombine.high %v465_v2, %v469_v3 }
  0xa7   :  { %1202 = vmatpush1.bf16.msra.mxu0 %v1427_v49  ;;  %v422_v49 = vld [vmem:[#allocation10 + $0x168] sm:$0xff] }
  0xa8   :  { %1594 = vmatpush1.bf16.msra.mxu1 %v1593_v5  ;;  %1203 = vmatprep.subr.bf16.mxu0 %v1436_v52  ;;  %v1467_v5 = vcombine.low %v465_v2, %v469_v3  ;;  %v1422_v23 = vcombine.high %v418_v48, %v422_v49  ;;  %v1421_v51 = vcombine.low %v418_v48, %v422_v49  ;;  %v462_v2 = vld [vmem:[#allocation10 + $0x2a8] sm:$0xff]  ;;  %v286_v48 = vld [vmem:[%s1962_s5] sm:$0x3]  ;;  %s1780_s5 = smov [#allocation13]  }
  0xa9   :  { %1596 = vmatprep.subr.bf16.mxu1 %v1595_v8  ;;  %v1476_v8 = vcombine.high %v473_v6, %v477_v7  ;;  %v470_v6 = vld [vmem:[#allocation10 + $0x2e8] sm:$0xff]  ;;  %s1367_s27 = sshll.u32 %s1780_s5, 4  ;;  %s1368_s27 = int_to_ptr.vmem [resolvable:$true] %s1367_s27 }
  0xaa   :  { %s1737_s28 = scalar_lea.vmem %s1368_s27, 1024  ;;  %p1742_p4 = scmp.lt.s32.totalorder %s1368_s27, %s1368_s27 }
  0xab   :  { %1204 = vmatpush1.bf16.msra.mxu0 %v1435_v53  ;;  %v434_v53 = vld [vmem:[#allocation10 + $0x1c8] sm:$0xff]  ;;  %p1738_p3 = scmp.ne.s32.totalorder %s1368_s27, %s1737_s28  ;;  %p1743_p5 = scmp.lt.s32.totalorder %s1737_s28, %s1737_s28 }
  0xac   :  { %1598 = vmatpush1.bf16.msra.mxu1 %v1597_v11  ;;  %1205 = vmatprep.subr.bf16.mxu0 %v1444_v56  ;;  %v485_v11 = vld [vmem:[#allocation10 + $0x360] sm:$0xff]  ;;  %v1438_v56 = vcombine.high %v434_v53, %v438_v54  ;;  %v1437_v59 = vcombine.low %v434_v53, %v438_v54 }
  0xad   :  { %1600 = vmatprep.subr.bf16.mxu1 %v1599_v14  ;;  %v1484_v12 = vcombine.high %v481_v10, %v485_v11  ;;  %v1483_v13 = vcombine.low %v481_v10, %v485_v11  ;;  %v133_v14 = vlaneseq  ;;  %v478_v10 = vld [vmem:[#allocation10 + $0x328] sm:$0xff]  ;;  %p1744_p6 = por %p1743_p5, %p1742_p4 }
  0xaf   :  { %1206 = vmatpush1.bf16.msra.mxu0 %v1443_v57  ;;  %v1910_v15 = vshrl.u32 %v133_v14, 7  ;;  %v442_v57 = vld [vmem:[#allocation10 + $0x208] sm:$0xff]  ;;  %p1745_p7 = pnand %p1744_p6, %p1738_p3 }
  0xb0   :  { %1602 = vmatpush1.bf16.msra.mxu1 %v1601_v17  ;;  %1207 = vmatprep.subr.bf16.mxu0 %v1452_v60  ;;  %v131_v17 = vld [vmem:[%s1960_s3] sm:$0x3]  ;;  %v1446_v60 = vcombine.high %v442_v57, %v446_v58  ;;  %v1445_v63 = vcombine.low %v442_v57, %v446_v58  ;;  %v486_v14 = vld [vmem:[#allocation10 + $0x368] sm:$0xff]  ;;  %s1378_s3 = sld [smem:[#allocation3 + $0x1]]  ;;  %v391_v58 = vld [vmem:[#allocation10 + $0x70] sm:$0xff] }
  0xb1   :  { %1230 = vmatprep.subr.bf16.mxu1 %v1382_v27  ;;  %v1913_v16 = vsub.s32 0, %v1910_v15  ;;  %v1919_v18 = vsub.s32 1, %v1910_v15 }
  0xb3   :  { %1208 = vmatpush1.bf16.msra.mxu0 %v1451_v61  ;;  %v136_v19 = vrot.slane %v131_v17, %v1913_v16  ;;  %v140_v21 = vrot.slane %v131_v17, %v1919_v18  ;;  %v450_v61 = vld [vmem:[#allocation10 + $0x248] sm:$0xff]  ;;  %v291_v49 = vrot.slane %v286_v48, %v1913_v16 }
  0xb4   :  { %1209 = vmatprep.subr.bf16.mxu0 %v1460_v0  ;;  %v1454_v0 = vcombine.high %v450_v61, %v454_v62  ;;  %v1453_v3 = vcombine.low %v450_v61, %v454_v62 }
  0xb7   :  { %1210 = vmatpush1.bf16.msra.mxu0 %v1459_v1  ;;  %v458_v1 = vld [vmem:[#allocation10 + $0x288] sm:$0xff] }
  0xb8   :  { %1211 = vmatprep.subr.bf16.mxu0 %v1468_v4  ;;  %v1462_v4 = vcombine.high %v458_v1, %v462_v2  ;;  %v1461_v7 = vcombine.low %v458_v1, %v462_v2  ;;  %v399_v2 = vld [vmem:[#allocation10 + $0xb0] sm:$0xff] }
  0xbb   :  { %1212 = vmatpush1.bf16.msra.mxu0 %v1467_v5  ;;  %v466_v5 = vld [vmem:[#allocation10 + $0x2c8] sm:$0xff] }
  0xbc   :  { %1213 = vmatprep.subr.bf16.mxu0 %v1476_v8  ;;  %v1470_v8 = vcombine.high %v466_v5, %v470_v6  ;;  %v1469_v11 = vcombine.low %v466_v5, %v470_v6 }
  0xbf   :  { %1214 = vmatpush1.bf16.msra.mxu0 %v1475_v9  ;;  %v474_v9 = vld [vmem:[#allocation10 + $0x308] sm:$0xff] }
  0xc0   :  { %1215 = vmatprep.subr.bf16.mxu0 %v1484_v12  ;;  %v1478_v12 = vcombine.high %v474_v9, %v478_v10  ;;  %v1477_v17 = vcombine.low %v474_v9, %v478_v10  ;;  %v403_v9 = vld [vmem:[#allocation10 + $0xd0] sm:$0xff] }
  0xc1   :  { %v407_v10 = vld [vmem:[#allocation10 + $0xf0] sm:$0xff] }
  0xc3   :  { %1216 = vmatpush1.bf16.msra.mxu0 %v1483_v13  ;;  %v482_v13 = vld [vmem:[#allocation10 + $0x348] sm:$0xff] }
 0x15f   :  { %v209_v22 = vpop.f32.mrb[0].mxu0 }
 0x160   :  { %v210_v25 = vadd.f32 %v209_v22, %v136_v19  ;;  %v211_v27 = vpop.f32.mrb[1].mxu0  ;;  %v1486_v19 = vcombine.high %v482_v13, %v486_v14  ;;  %v489_v22 = vld [vmem:[#allocation10 + $0x380] sm:$0xff] }
 0x161   :  { %v212_v28 = vadd.f32 %v211_v27, %v140_v21  ;;  %v1485_v21 = vcombine.low %v482_v13, %v486_v14 }
 0x162   :  { %v218_v29 = vmul.f32 %v217_v24, %v210_v25  ;;  %vm215_vm1 = vcmp.gt.f32.partialorder %v210_v25, 0.0 }
 0x163   :  { %vm216_vm0 = vcmp.gt.f32.partialorder %v212_v28, 0.0  ;;  %v219_v32 = vmul.f32 %v217_v24, %v212_v28  ;;  %v493_v24 = vld [vmem:[#allocation10 + $0x3a0] sm:$0xff] }
 0x164   :  { %v220_v35 = vsel %vm215_vm1, %v210_v25, %v218_v29  ;;  %v490_v25 = vld [vmem:[#allocation10 + $0x388] sm:$0xff]  ;;  %v1492_v27 = vcombine.high %v489_v22, %v493_v24  ;;  %v1491_v29 = vcombine.low %v489_v22, %v493_v24  ;;  %v415_v22 = vld [vmem:[#allocation10 + $0x130] sm:$0xff]  ;;  %v412_v24 = vld [vmem:[#allocation10 + $0x118] sm:$0xff] }
 0x165   :  { %v221_v33 = vsel %vm216_vm0, %v212_v28, %v219_v32  ;;  %v494_v28 = vld [vmem:[#allocation10 + $0x3a8] sm:$0xff]  ;;  %v497_v32 = vld [vmem:[#allocation10 + $0x3c0] sm:$0xff] }
 0x166   :  { %362 = vmatprep.mubr.f32.mxu1 %v221_v33  ;;  %v1493_v30 = vcombine.low %v490_v25, %v494_v28  ;;  %v1494_v31 = vcombine.high %v490_v25, %v494_v28  ;;  %1217 = vmatprep.subr.bf16.mxu0 %v1492_v27  ;;  %v501_v33 = vld [vmem:[#allocation10 + $0x3e0] sm:$0xff]  ;;  %v416_v25 = vld [vmem:[#allocation10 + $0x138] sm:$0xff]  ;;  %v1407_v27 = vcombine.low %v403_v9, %v407_v10 }
 0x167   :  { %363 = vmatmul.mubr.f32.vlgmr.msra.gmra.mrb[0].mxu1 %v220_v35  ;;  %1218 = vmatpush1.bf16.msra.mxu0 %v1491_v29  ;;  %v1500_v35 = vcombine.high %v497_v32, %v501_v33  ;;  %v1499_v37 = vcombine.low %v497_v32, %v501_v33  ;;  %v423_v32 = vld [vmem:[#allocation10 + $0x170] sm:$0xff]  ;;  %v420_v33 = vld [vmem:[#allocation10 + $0x158] sm:$0xff] }
 0x168   :  { %1231 = vmatpush1.bf16.msra.mxu1 %v1381_v26  ;;  %v426_v26 = vld [vmem:[#allocation10 + $0x188] sm:$0xff] }
 0x169   :  { %1232 = vmatprep.subr.bf16.mxu1 %v1390_v34  ;;  %v1430_v52 = vcombine.high %v426_v26, %v430_v50  ;;  %v1429_v55 = vcombine.low %v426_v26, %v430_v50  ;;  %v498_v34 = vld [vmem:[#allocation10 + $0x3c8] sm:$0xff]  ;;  %1219 = vmatprep.subr.bf16.mxu0 %v1500_v35  ;;  %v372_v26 = vstv %s1378_s3 }
 0x16b   :  { %1220 = vmatpush1.bf16.msra.mxu0 %v1499_v37 }
 0x16c   :  { %1233 = vmatpush1.bf16.msra.mxu1 %v1389_v38  ;;  %v1501_v38 = vcombine.low %v498_v34, %v502_v36 }
 0x16d   :  { %1234 = vmatprep.subr.bf16.mxu1 %v1398_v39  ;;  %v1502_v39 = vcombine.high %v498_v34, %v502_v36  ;;  %v424_v34 = vld [vmem:[#allocation10 + $0x178] sm:$0xff]  ;;  %v1417_v36 = vcombine.low %v412_v24, %v416_v25 }
 0x170   :  { %1235 = vmatpush1.bf16.msra.mxu1 %v1397_v42  ;;  %v380_v42 = vld [vmem:[#allocation10 + $0x18] sm:$0xff] }
 0x171   :  { %1236 = vmatprep.subr.bf16.mxu1 %v1406_v43  ;;  %v1384_v43 = vcombine.high %v379_v40, %v383_v41  ;;  %v431_v40 = vld [vmem:[#allocation10 + $0x1b0] sm:$0xff]  ;;  %v428_v41 = vld [vmem:[#allocation10 + $0x198] sm:$0xff] }
 0x173   :  { %1271 = vmatprep.subr.bf16.mxu0 %v1384_v43 }
 0x174   :  { %1237 = vmatpush1.bf16.msra.mxu1 %v1405_v46  ;;  %v1385_v46 = vcombine.low %v380_v42, %v384_v44 }
 0x175   :  { %1238 = vmatprep.subr.bf16.mxu1 %v1414_v47  ;;  %v1386_v47 = vcombine.high %v380_v42, %v384_v44  ;;  %v432_v42 = vld [vmem:[#allocation10 + $0x1b8] sm:$0xff]  ;;  %v1425_v44 = vcombine.low %v420_v33, %v424_v34 }
 0x178   :  { %1239 = vmatpush1.bf16.msra.mxu1 %v1413_v20  ;;  %v295_v20 = vrot.slane %v286_v48, %v1919_v18  ;;  %v439_v48 = vld [vmem:[#allocation10 + $0x1f0] sm:$0xff] }
 0x179   :  { %1240 = vmatprep.subr.bf16.mxu1 %v1422_v23 }
 0x17c   :  { %1241 = vmatpush1.bf16.msra.mxu1 %v1421_v51 }
 0x17d   :  { %1242 = vmatprep.subr.bf16.mxu1 %v1430_v52 }
 0x180   :  { %1243 = vmatpush1.bf16.msra.mxu1 %v1429_v55 }
 0x181   :  { %1244 = vmatprep.subr.bf16.mxu1 %v1438_v56  ;;  %v387_v56 = vld [vmem:[#allocation10 + $0x50] sm:$0xff] }
 0x182   :  { %v1391_v5 = vcombine.low %v387_v56, %v391_v58 }
 0x184   :  { %1245 = vmatpush1.bf16.msra.mxu1 %v1437_v59  ;;  %v388_v59 = vld [vmem:[#allocation10 + $0x58] sm:$0xff] }
 0x185   :  { %1246 = vmatprep.subr.bf16.mxu1 %v1446_v60  ;;  %v392_v60 = vld [vmem:[#allocation10 + $0x78] sm:$0xff] }
 0x186   :  { %v1394_v1 = vcombine.high %v388_v59, %v392_v60  ;;  %v1393_v6 = vcombine.low %v388_v59, %v392_v60  ;;  %v451_v60 = vld [vmem:[#allocation10 + $0x250] sm:$0xff] }
 0x188   :  { %1247 = vmatpush1.bf16.msra.mxu1 %v1445_v63  ;;  %v395_v63 = vld [vmem:[#allocation10 + $0x90] sm:$0xff] }
 0x189   :  { %1248 = vmatprep.subr.bf16.mxu1 %v1454_v0  ;;  %v1392_v0 = vcombine.high %v387_v56, %v391_v58  ;;  %v1399_v13 = vcombine.low %v395_v63, %v399_v2 }
 0x18c   :  { %1249 = vmatpush1.bf16.msra.mxu1 %v1453_v3  ;;  %v396_v3 = vld [vmem:[#allocation10 + $0x98] sm:$0xff] }
 0x18d   :  { %1250 = vmatprep.subr.bf16.mxu1 %v1462_v4  ;;  %v400_v4 = vld [vmem:[#allocation10 + $0xb8] sm:$0xff] }
 0x18e   :  { %v1401_v14 = vcombine.low %v396_v3, %v400_v4 }
 0x190   :  { %1251 = vmatpush1.bf16.msra.mxu1 %v1461_v7  ;;  %v1400_v7 = vcombine.high %v395_v63, %v399_v2  ;;  %v452_v63 = vld [vmem:[#allocation10 + $0x258] sm:$0xff] }
 0x191   :  { %1252 = vmatprep.subr.bf16.mxu1 %v1470_v8  ;;  %v1402_v8 = vcombine.high %v396_v3, %v400_v4 }
 0x194   :  { %1253 = vmatpush1.bf16.msra.mxu1 %v1469_v11  ;;  %v404_v11 = vld [vmem:[#allocation10 + $0xd8] sm:$0xff] }
 0x195   :  { %1254 = vmatprep.subr.bf16.mxu1 %v1478_v12  ;;  %v408_v12 = vld [vmem:[#allocation10 + $0xf8] sm:$0xff] }
 0x196   :  { %v1409_v28 = vcombine.low %v404_v11, %v408_v12 }
 0x198   :  { %1255 = vmatpush1.bf16.msra.mxu1 %v1477_v17  ;;  %v1408_v17 = vcombine.high %v403_v9, %v407_v10 }
 0x199   :  { %1256 = vmatprep.subr.bf16.mxu1 %v1486_v19  ;;  %v1410_v19 = vcombine.high %v404_v11, %v408_v12 }
 0x19c   :  { %1257 = vmatpush1.bf16.msra.mxu1 %v1485_v21  ;;  %v411_v21 = vld [vmem:[#allocation10 + $0x110] sm:$0xff] }
 0x19d   :  { %1258 = vmatprep.subr.bf16.mxu1 %v1494_v31  ;;  %v1416_v29 = vcombine.high %v411_v21, %v415_v22  ;;  %v419_v31 = vld [vmem:[#allocation10 + $0x150] sm:$0xff]  ;;  %v1415_v35 = vcombine.low %v411_v21, %v415_v22 }
 0x19e   :  { %v1424_v37 = vcombine.high %v419_v31, %v423_v32  ;;  %v1423_v43 = vcombine.low %v419_v31, %v423_v32 }
 0x1a0   :  { %1259 = vmatpush1.bf16.msra.mxu1 %v1493_v30  ;;  %v1418_v30 = vcombine.high %v412_v24, %v416_v25 }
 0x1a1   :  { %1260 = vmatprep.subr.bf16.mxu1 %v1502_v39  ;;  %v427_v39 = vld [vmem:[#allocation10 + $0x190] sm:$0xff] }
 0x1a4   :  { %1261 = vmatpush1.bf16.msra.mxu1 %v1501_v38  ;;  %v1426_v38 = vcombine.high %v420_v33, %v424_v34 }
 0x1a5   :  { %1312 = vmatprep.subr.bf16.mxu1 %v1386_v47  ;;  %v435_v47 = vld [vmem:[#allocation10 + $0x1d0] sm:$0xff] }
 0x1a6   :  { %v1439_v56 = vcombine.low %v435_v47, %v439_v48 }
 0x23a   :  { %v364_v23 = vpop.f32.mrb[0].mxu1 }
 0x23b   :  { %v365_v50 = vadd.f32 %v364_v23, %v291_v49  ;;  %v366_v51 = vpop.f32.mrb[1].mxu1  ;;  %v436_v49 = vld [vmem:[#allocation10 + $0x1d8] sm:$0xff]  ;;  %v1431_v23 = vcombine.low %v427_v39, %v431_v40 }
 0x23c   :  { %v367_v52 = vadd.f32 %v366_v51, %v295_v20  ;;  %v440_v20 = vld [vmem:[#allocation10 + $0x1f8] sm:$0xff] }
 0x23d   :  { %vm370_vm2 = vcmp.gt.f32.partialorder %v365_v50, 0.0  ;;  %v373_v53 = vmul.f32 %v372_v26, %v365_v50  ;;  %v1442_v51 = vcombine.high %v436_v49, %v440_v20 }
 0x23e   :  { %vm371_vm3 = vcmp.gt.f32.partialorder %v367_v52, 0.0  ;;  %v374_v54 = vmul.f32 %v372_v26, %v367_v52  ;;  %v1433_v26 = vcombine.low %v428_v41, %v432_v42 }
 0x23f   :  { %v375_v55 = vsel %vm370_vm2, %v365_v50, %v373_v53  ;;  %v1440_v50 = vcombine.high %v435_v47, %v439_v48  ;;  %v447_v53 = vld [vmem:[#allocation10 + $0x230] sm:$0xff] }
 0x240   :  { %v376_v57 = vsel %vm371_vm3, %v367_v52, %v374_v54  ;;  %v1931_v62 = vpack.c.bf16 %v375_v55, %v375_v55  ;;  %v443_v52 = vld [vmem:[#allocation10 + $0x210] sm:$0xff]  ;;  %v444_v54 = vld [vmem:[#allocation10 + $0x218] sm:$0xff] }
 0x241   :  { %v506_v61 = vpack.c.bf16 %v376_v57, %v376_v57  ;;  %v448_v55 = vld [vmem:[#allocation10 + $0x238] sm:$0xff]  ;;  %v1441_v57 = vcombine.low %v436_v49, %v440_v20  ;;  %v1448_v58 = vcombine.high %v443_v52, %v447_v53 }
 0x242   :  { %v1450_v59 = vcombine.high %v444_v54, %v448_v55  ;;  %v1449_v2 = vcombine.low %v444_v54, %v448_v55 }
 0x243   :  { %1221 = vmatprep.mubr.bf16.mxu0 %v506_v61  ;;  %1262 = vmatprep.mubr.bf16.mxu1 %v506_v61 }
 0x244   :  { %1222 = vmatmul.mubr.bf16.vlgmr.msra.gmra.mrb[4].mxu0 %v1931_v62  ;;  %1263 = vmatmul.mubr.bf16.vlgmr.msra.gmra.mrb[4].mxu1 %v1931_v62 }
 0x245   :  { %1272 = vmatpush1.bf16.msra.mxu0 %v1383_v45  ;;  %1313 = vmatpush1.bf16.msra.mxu1 %v1385_v46  ;;  %v1432_v45 = vcombine.high %v427_v39, %v431_v40  ;;  %v1434_v46 = vcombine.high %v428_v41, %v432_v42 }
 0x246   :  { %1303 = vmatprep.mubr.bf16.mxu0 %v506_v61  ;;  %1344 = vmatprep.mubr.bf16.mxu1 %v506_v61  ;;  %v455_v61 = vld [vmem:[#allocation10 + $0x270] sm:$0xff] }
 0x247   :  { %1273 = vmatprep.subr.bf16.mxu0 %v1392_v0  ;;  %1314 = vmatprep.subr.bf16.mxu1 %v1394_v1  ;;  %v456_v0 = vld [vmem:[#allocation10 + $0x278] sm:$0xff]  ;;  %v1447_v1 = vcombine.low %v443_v52, %v447_v53  ;;  %v1456_v3 = vcombine.high %v451_v60, %v455_v61  ;;  %v1455_v9 = vcombine.low %v451_v60, %v455_v61  ;;  %v523_v60 = vsub.s32 3, %v1910_v15 }
 0x248   :  { %v1458_v4 = vcombine.high %v452_v63, %v456_v0  ;;  %v1457_v10 = vcombine.low %v452_v63, %v456_v0 }
 0x249   :  { %1274 = vmatpush1.bf16.msra.mxu0 %v1391_v5  ;;  %1315 = vmatpush1.bf16.msra.mxu1 %v1393_v6  ;;  %v459_v5 = vld [vmem:[#allocation10 + $0x290] sm:$0xff] }
 0x24a   :  { %1275 = vmatprep.subr.bf16.mxu0 %v1400_v7  ;;  %1316 = vmatprep.subr.bf16.mxu1 %v1402_v8  ;;  %v463_v6 = vld [vmem:[#allocation10 + $0x2b0] sm:$0xff]  ;;  %v460_v7 = vld [vmem:[#allocation10 + $0x298] sm:$0xff] }
 0x24b   :  { %v464_v8 = vld [vmem:[#allocation10 + $0x2b8] sm:$0xff]  ;;  %v1464_v11 = vcombine.high %v459_v5, %v463_v6  ;;  %v1463_v21 = vcombine.low %v459_v5, %v463_v6 }
 0x24c   :  { %v1466_v12 = vcombine.high %v460_v7, %v464_v8  ;;  %v1465_v22 = vcombine.low %v460_v7, %v464_v8 }
 0x24d   :  { %1276 = vmatpush1.bf16.msra.mxu0 %v1399_v13  ;;  %1317 = vmatpush1.bf16.msra.mxu1 %v1401_v14  ;;  %v467_v13 = vld [vmem:[#allocation10 + $0x2d0] sm:$0xff] }
 0x24e   :  { %1277 = vmatprep.subr.bf16.mxu0 %v1408_v17  ;;  %1318 = vmatprep.subr.bf16.mxu1 %v1410_v19  ;;  %v471_v14 = vld [vmem:[#allocation10 + $0x2f0] sm:$0xff]  ;;  %v468_v17 = vld [vmem:[#allocation10 + $0x2d8] sm:$0xff] }
 0x24f   :  { %v472_v19 = vld [vmem:[#allocation10 + $0x2f8] sm:$0xff]  ;;  %v1472_v24 = vcombine.high %v467_v13, %v471_v14  ;;  %v1471_v31 = vcombine.low %v467_v13, %v471_v14  ;;  %v531_v13 = vsub.s32 5, %v1910_v15  ;;  %v539_v14 = vsub.s32 7, %v1910_v15 }
 0x250   :  { %v1474_v25 = vcombine.high %v468_v17, %v472_v19  ;;  %v1473_v32 = vcombine.low %v468_v17, %v472_v19 }
 0x251   :  { %1278 = vmatpush1.bf16.msra.mxu0 %v1407_v27  ;;  %1319 = vmatpush1.bf16.msra.mxu1 %v1409_v28  ;;  %v475_v27 = vld [vmem:[#allocation10 + $0x310] sm:$0xff] }
 0x252   :  { %1279 = vmatprep.subr.bf16.mxu0 %v1416_v29  ;;  %1320 = vmatprep.subr.bf16.mxu1 %v1418_v30  ;;  %v479_v28 = vld [vmem:[#allocation10 + $0x330] sm:$0xff]  ;;  %v476_v29 = vld [vmem:[#allocation10 + $0x318] sm:$0xff] }
 0x253   :  { %v480_v30 = vld [vmem:[#allocation10 + $0x338] sm:$0xff]  ;;  %v1480_v33 = vcombine.high %v475_v27, %v479_v28  ;;  %v1479_v39 = vcombine.low %v475_v27, %v479_v28 }
 0x254   :  { %v1482_v34 = vcombine.high %v476_v29, %v480_v30  ;;  %v1481_v40 = vcombine.low %v476_v29, %v480_v30 }
 0x255   :  { %1280 = vmatpush1.bf16.msra.mxu0 %v1415_v35  ;;  %1321 = vmatpush1.bf16.msra.mxu1 %v1417_v36  ;;  %v483_v35 = vld [vmem:[#allocation10 + $0x350] sm:$0xff] }
 0x256   :  { %1281 = vmatprep.subr.bf16.mxu0 %v1424_v37  ;;  %1322 = vmatprep.subr.bf16.mxu1 %v1426_v38  ;;  %v487_v36 = vld [vmem:[#allocation10 + $0x370] sm:$0xff]  ;;  %v484_v37 = vld [vmem:[#allocation10 + $0x358] sm:$0xff] }
 0x257   :  { %v488_v38 = vld [vmem:[#allocation10 + $0x378] sm:$0xff]  ;;  %v1488_v41 = vcombine.high %v483_v35, %v487_v36  ;;  %v1487_v47 = vcombine.low %v483_v35, %v487_v36 }
 0x258   :  { %v1490_v42 = vcombine.high %v484_v37, %v488_v38  ;;  %v1489_v48 = vcombine.low %v484_v37, %v488_v38 }
 0x259   :  { %1282 = vmatpush1.bf16.msra.mxu0 %v1423_v43  ;;  %1323 = vmatpush1.bf16.msra.mxu1 %v1425_v44  ;;  %v491_v43 = vld [vmem:[#allocation10 + $0x390] sm:$0xff] }
 0x25a   :  { %1283 = vmatprep.subr.bf16.mxu0 %v1432_v45  ;;  %1324 = vmatprep.subr.bf16.mxu1 %v1434_v46  ;;  %v495_v44 = vld [vmem:[#allocation10 + $0x3b0] sm:$0xff]  ;;  %v492_v45 = vld [vmem:[#allocation10 + $0x398] sm:$0xff] }
 0x25b   :  { %v496_v46 = vld [vmem:[#allocation10 + $0x3b8] sm:$0xff]  ;;  %v1496_v49 = vcombine.high %v491_v43, %v495_v44  ;;  %v1495_v52 = vcombine.low %v491_v43, %v495_v44 }
 0x25c   :  { %v1498_v20 = vcombine.high %v492_v45, %v496_v46  ;;  %v1497_v53 = vcombine.low %v492_v45, %v496_v46 }
 0x25d   :  { %1284 = vmatpush1.bf16.msra.mxu0 %v1431_v23  ;;  %1325 = vmatpush1.bf16.msra.mxu1 %v1433_v26  ;;  %v499_v23 = vld [vmem:[#allocation10 + $0x3d0] sm:$0xff] }
 0x25e   :  { %1285 = vmatprep.subr.bf16.mxu0 %v1440_v50  ;;  %1326 = vmatprep.subr.bf16.mxu1 %v1442_v51  ;;  %v503_v26 = vld [vmem:[#allocation10 + $0x3f0] sm:$0xff]  ;;  %v500_v50 = vld [vmem:[#allocation10 + $0x3d8] sm:$0xff] }
 0x25f   :  { %v504_v51 = vld [vmem:[#allocation10 + $0x3f8] sm:$0xff]  ;;  %v1504_v54 = vcombine.high %v499_v23, %v503_v26 }
 0x260   :  { %v1506_v55 = vcombine.high %v500_v50, %v504_v51 }
 0x261   :  { %1286 = vmatpush1.bf16.msra.mxu0 %v1439_v56  ;;  %1327 = vmatpush1.bf16.msra.mxu1 %v1441_v57  ;;  %v1503_v56 = vcombine.low %v499_v23, %v503_v26  ;;  %v1505_v57 = vcombine.low %v500_v50, %v504_v51 }
 0x262   :  { %1287 = vmatprep.subr.bf16.mxu0 %v1448_v58  ;;  %1328 = vmatprep.subr.bf16.mxu1 %v1450_v59  ;;  %v519_v58 = vsub.s32 2, %v1910_v15  ;;  %v507_v59 = vld [vmem:[#allocation12] sm:$0xff] }
 0x263   :  { %v512_v61 = vrot.slane %v507_v59, %v1913_v16  ;;  %v516_v0 = vrot.slane %v507_v59, %v1919_v18  ;;  %v527_v16 = vsub.s32 4, %v1910_v15  ;;  %v535_v18 = vsub.s32 6, %v1910_v15 }
 0x264   :  { %v520_v63 = vrot.slane %v507_v59, %v519_v58 }
 0x265   :  { %1288 = vmatpush1.bf16.msra.mxu0 %v1447_v1  ;;  %1329 = vmatpush1.bf16.msra.mxu1 %v1449_v2  ;;  %v524_v1 = vrot.slane %v507_v59, %v523_v60  ;;  %v528_v17 = vrot.slane %v507_v59, %v527_v16  ;;  %v536_v19 = vrot.slane %v507_v59, %v535_v18 }
 0x266   :  { %1289 = vmatprep.subr.bf16.mxu0 %v1456_v3  ;;  %1330 = vmatprep.subr.bf16.mxu1 %v1458_v4 }
 0x269   :  { %1290 = vmatpush1.bf16.msra.mxu0 %v1455_v9  ;;  %1331 = vmatpush1.bf16.msra.mxu1 %v1457_v10 }
 0x26a   :  { %1291 = vmatprep.subr.bf16.mxu0 %v1464_v11  ;;  %1332 = vmatprep.subr.bf16.mxu1 %v1466_v12 }
 0x26d   :  { %1292 = vmatpush1.bf16.msra.mxu0 %v1463_v21  ;;  %1333 = vmatpush1.bf16.msra.mxu1 %v1465_v22  ;;  %v532_v21 = vrot.slane %v507_v59, %v531_v13  ;;  %v540_v22 = vrot.slane %v507_v59, %v539_v14 }
 0x26e   :  { %1293 = vmatprep.subr.bf16.mxu0 %v1472_v24  ;;  %1334 = vmatprep.subr.bf16.mxu1 %v1474_v25 }
 0x271   :  { %1294 = vmatpush1.bf16.msra.mxu0 %v1471_v31  ;;  %1335 = vmatpush1.bf16.msra.mxu1 %v1473_v32 }
 0x272   :  { %1295 = vmatprep.subr.bf16.mxu0 %v1480_v33  ;;  %1336 = vmatprep.subr.bf16.mxu1 %v1482_v34 }
 0x275   :  { %1296 = vmatpush1.bf16.msra.mxu0 %v1479_v39  ;;  %1337 = vmatpush1.bf16.msra.mxu1 %v1481_v40 }
 0x276   :  { %1297 = vmatprep.subr.bf16.mxu0 %v1488_v41  ;;  %1338 = vmatprep.subr.bf16.mxu1 %v1490_v42 }
 0x279   :  { %1298 = vmatpush1.bf16.msra.mxu0 %v1487_v47  ;;  %1339 = vmatpush1.bf16.msra.mxu1 %v1489_v48 }
 0x27a   :  { %1299 = vmatprep.subr.bf16.mxu0 %v1496_v49  ;;  %1340 = vmatprep.subr.bf16.mxu1 %v1498_v20 }
 0x27d   :  { %1300 = vmatpush1.bf16.msra.mxu0 %v1495_v52  ;;  %1341 = vmatpush1.bf16.msra.mxu1 %v1497_v53 }
 0x27e   :  { %1301 = vmatprep.subr.bf16.mxu0 %v1504_v54  ;;  %1342 = vmatprep.subr.bf16.mxu1 %v1506_v55 }
 0x281   :  { %1302 = vmatpush1.bf16.msra.mxu0 %v1503_v56  ;;  %1343 = vmatpush1.bf16.msra.mxu1 %v1505_v57 }
 0x284   :  { %1304 = vmatmul.mubr.bf16.vlgmr.msra.gmra.mrb[8].mxu0 %v1931_v62  ;;  %1345 = vmatmul.mubr.bf16.vlgmr.msra.gmra.mrb[8].mxu1 %v1931_v62 }
 0x317   :  { %v1223_v2 = vpop.f32.mrb[4].mxu0  ;;  %v1264_v3 = vpop.f32.mrb[4].mxu1 }
 0x318   :  { %v1224_v4 = vadd.f32 %v1223_v2, %v512_v61  ;;  %v1265_v5 = vadd.f32 %v1264_v3, %v520_v63  ;;  %v1225_v6 = vpop.f32.mrb[5].mxu0  ;;  %v1266_v7 = vpop.f32.mrb[5].mxu1 }
 0x319   :  { %v1226_v8 = vadd.f32 %v1225_v6, %v516_v0  ;;  %v1267_v9 = vadd.f32 %v1266_v7, %v524_v1  ;;  %v1227_v62 = vpop.f32.mrb[6].mxu0  ;;  %v1268_v10 = vpop.f32.mrb[6].mxu1 }
 0x31a   :  { %1353 = vst [vmem:[#allocation13] sm:$0xff] %v1224_v4  ;;  %1355 = vst [vmem:[#allocation13 + $0x10] sm:$0xff] %v1265_v5  ;;  %v1228_v11 = vpop.f32.mrb[7].mxu0  ;;  %v1269_v12 = vpop.f32.mrb[7].mxu1 }
 0x31b   :  { %1354 = vst [vmem:[#allocation13 + $0x8] sm:$0xff] %v1226_v8  ;;  %1356 = vst [vmem:[#allocation13 + $0x18] sm:$0xff] %v1267_v9 }
 0x357   :  { %v1305_v24 = vpop.f32.mrb[8].mxu0  ;;  %v1346_v25 = vpop.f32.mrb[8].mxu1 }
 0x358   :  { %v1306_v27 = vadd.f32 %v1305_v24, %v528_v17  ;;  %v1347_v28 = vadd.f32 %v1346_v25, %v536_v19  ;;  %v1307_v29 = vpop.f32.mrb[9].mxu0  ;;  %v1348_v30 = vpop.f32.mrb[9].mxu1 }
 0x359   :  { %v1308_v31 = vadd.f32 %v1307_v29, %v532_v21  ;;  %v1349_v32 = vadd.f32 %v1348_v30, %v540_v22  ;;  %v1309_v33 = vpop.f32.mrb[10].mxu0  ;;  %v1350_v34 = vpop.f32.mrb[10].mxu1 }
 0x35a   :  { %1357 = vst [vmem:[#allocation13 + $0x20] sm:$0xff] %v1306_v27  ;;  %1359 = vst [vmem:[#allocation13 + $0x30] sm:$0xff] %v1347_v28  ;;  %v1310_v15 = vpop.f32.mrb[11].mxu0  ;;  %v1351_v35 = vpop.f32.mrb[11].mxu1 }
 0x35b   :  { %1358 = vst [vmem:[#allocation13 + $0x28] sm:$0xff] %v1308_v31  ;;  %1360 = vst [vmem:[#allocation13 + $0x38] sm:$0xff] %v1349_v32 }
 0x35c   :  { %1748 = shalt.err (!%p1745_p7)
}
 0x35d   :  { %s1749_s9 = scalar_lea.hbm %s1965_s8, 1024 }
 0x35e   :  { %p1750_p8 = scmp.ne.s32.totalorder %s1965_s8, %s1749_s9  ;;  %p1753_p9 = scmp.lt.u32.totalorder %s1749_s9, %s1965_s8 }
 0x360   :  { %p1755_p10 = pnand %p1753_p9, %p1750_p8 }
 0x362   :  { %1758 = shalt.err (!%p1755_p10)
}
 0x363   :  { %1370 = dma.vmem_to_hbm [thread:$0]  %s1368_s27, 1024, %s1965_s8, [#allocation6]  }
 0x364   :  { %1767 = dma.done.wait [#allocation6], 1024  }
 0x365   :  { %1768 = vsyncadd [#allocation6], 4294966272 }
 0x366   :  { %1374 = vsyncpa [#allocation5], 1 }
 0x367   :  { %1375 = vsyncpa [#allocation8], 1 }
 0x368   :  { %1376 = vsyncpa [#allocation11], 1 }
 0x369   :  { %1377 = vsyncpa [#allocation6], 1 }

</bundles_post_ra>
